<compile_context>
chip_gen: v5e
topology: v5e:2x2
jax: 0.10.0
libtpu: 0.0.40
codegen_flags: <defaults>
</compile_context>

<pallas_src>
import jax
import jax.numpy as jnp
from jax.experimental import pallas as pl
from jax.experimental.pallas import tpu as pltpu


def dqn_kernel(x_ref, w1_ref, b1_ref, w2_ref, b2_ref, w3_ref, b3_ref, o_ref):
    # Cast the f32 activations to bf16 in-register (no extra HBM pass).
    x = x_ref[...].astype(w1_ref.dtype)
    # Layer 1: Linear (bf16 MXU, f32 acc) + bias + ReLU in f32
    h1 = jnp.dot(x, w1_ref[...], preferred_element_type=jnp.float32)
    h1 = jnp.maximum(h1 + b1_ref[...], 0.0)
    # Layer 2
    h2 = jnp.dot(h1.astype(w2_ref.dtype), w2_ref[...],
                 preferred_element_type=jnp.float32)
    h2 = jnp.maximum(h2 + b2_ref[...], 0.0)
    # Layer 3: Q-values (no activation), unpadded action dim
    q = jnp.dot(h2.astype(w3_ref.dtype), w3_ref[...],
                preferred_element_type=jnp.float32)
    o_ref[...] = (q + b3_ref[...]).astype(o_ref.dtype)


def _round_up(n, m):
    return ((n + m - 1) // m) * m


def _choose_tile(B, block_b):
    """Pick a batch tile TB (multiple of 8) and padded batch Bp."""
    Bp8 = _round_up(max(B, 1), 8)
    TB = max(8, (min(block_b, Bp8) // 8) * 8)          # always a multiple of 8
    # v7x: prefer >=2 grid steps so the "parallel" batch axis can be sharded
    # across both TensorCores (harmless on single-TC v5e/v6e).
    if Bp8 // TB < 2 and Bp8 >= 16:
        TB = max(8, _round_up((Bp8 + 1) // 2, 8))
    Bp = _round_up(Bp8, TB)
    return TB, Bp


def prepare_params(params, compute_dtype=jnp.bfloat16):
    """One-time padding + bf16 cast of the weights (run only when params change).

    Hidden dims are zero-padded up to multiples of 128 (mathematically exact:
    padded hidden units are ReLU(0 + 0) = 0 and contribute nothing downstream).
    The final action dim is left unpadded so the output writeback stays small.
    """
    w1, b1 = params["w1"], params["b1"]
    w2, b2 = params["w2"], params["b2"]
    w3, b3 = params["w3"], params["b3"]
    S = w1.shape[0]
    H1, H2, A = w1.shape[1], w2.shape[1], w3.shape[1]
    H1p, H2p = _round_up(H1, 128), _round_up(H2, 128)
    cd = compute_dtype
    return {
        "w1": jnp.zeros((S, H1p), cd).at[:, :H1].set(w1.astype(cd)),
        "b1": jnp.zeros((1, H1p), jnp.float32).at[:, :H1].set(b1.astype(jnp.float32)),
        "w2": jnp.zeros((H1p, H2p), cd).at[:H1, :H2].set(w2.astype(cd)),
        "b2": jnp.zeros((1, H2p), jnp.float32).at[:, :H2].set(b2.astype(jnp.float32)),
        "w3": jnp.zeros((H2p, A), cd).at[:H2, :].set(w3.astype(cd)),
        "b3": b3.astype(jnp.float32).reshape(1, A),
    }


def dqn_forward(x, prepared, *, block_b=1024):
    """x: (B, num_state) float32.  prepared: output of prepare_params()."""
    w1p, b1p = prepared["w1"], prepared["b1"]
    w2p, b2p = prepared["w2"], prepared["b2"]
    w3p, b3p = prepared["w3"], prepared["b3"]

    B, S = x.shape
    assert S == w1p.shape[0], "num_state mismatch with prepared params"
    H1p, H2p, A = w1p.shape[1], w2p.shape[1], w3p.shape[1]

    TB, Bp = _choose_tile(B, block_b)

    x_f32 = x.astype(jnp.float32)
    if Bp != B:
        x_f32 = jnp.zeros((Bp, S), jnp.float32).at[:B].set(x_f32)

    grid = (Bp // TB,)

    # Cost estimate from what the kernel actually touches / computes.
    flops = 2 * Bp * (S * H1p + H1p * H2p + H2p * A)
    bytes_accessed = (
        x_f32.size * x_f32.dtype.itemsize
        + sum(a.size * a.dtype.itemsize for a in (w1p, b1p, w2p, b2p, w3p, b3p))
        + Bp * A * 4
    )
    cost = pl.CostEstimate(flops=flops, transcendentals=0,
                           bytes_accessed=bytes_accessed)

    out = pl.pallas_call(
        dqn_kernel,
        out_shape=jax.ShapeDtypeStruct((Bp, A), jnp.float32),
        grid=grid,
        in_specs=[
            pl.BlockSpec((TB, S), lambda i: (i, 0)),     # x: tiled over batch (f32)
            pl.BlockSpec((S, H1p), lambda i: (0, 0)),    # weights/biases: constant
            pl.BlockSpec((1, H1p), lambda i: (0, 0)),    #  index_map -> VMEM-resident
            pl.BlockSpec((H1p, H2p), lambda i: (0, 0)),  #  across the whole grid
            pl.BlockSpec((1, H2p), lambda i: (0, 0)),
            pl.BlockSpec((H2p, A), lambda i: (0, 0)),
            pl.BlockSpec((1, A), lambda i: (0, 0)),
        ],
        out_specs=pl.BlockSpec((TB, A), lambda i: (i, 0)),  # unpadded action dim
        compiler_params=pltpu.CompilerParams(
            dimension_semantics=("parallel",)),
        cost_estimate=cost,
    )(x_f32, w1p, b1p, w2p, b2p, w3p, b3p)

    return out[:B] if Bp != B else out


def init_dqn_params(key, num_state, num_action, hidden=(64, 64)):
    """PyTorch nn.Linear-style init (U[-1/sqrt(fan_in), 1/sqrt(fan_in)]).
    Weights stored as (in, out) == PyTorch weight.T so the kernel does x @ w."""
    dims = [num_state, hidden[0], hidden[1], num_action]
    params = {}
    for i in range(3):
        fan_in, fan_out = dims[i], dims[i + 1]
        key, kw, kb = jax.random.split(key, 3)
        bound = 1.0 / jnp.sqrt(float(fan_in))
        params[f"w{i+1}"] = jax.random.uniform(
            kw, (fan_in, fan_out), jnp.float32, -bound, bound)
        params[f"b{i+1}"] = jax.random.uniform(
            kb, (1, fan_out), jnp.float32, -bound, bound)
    return params


def dqn_reference(x, params, compute_dtype=jnp.bfloat16):
    """Pure-JAX reference using the same bf16-in / f32-accumulate recipe."""
    cd = compute_dtype
    h1 = jnp.maximum(
        jnp.dot(x.astype(cd), params["w1"].astype(cd),
                preferred_element_type=jnp.float32) + params["b1"], 0.0)
    h2 = jnp.maximum(
        jnp.dot(h1.astype(cd), params["w2"].astype(cd),
                preferred_element_type=jnp.float32) + params["b2"], 0.0)
    return jnp.dot(h2.astype(cd), params["w3"].astype(cd),
                   preferred_element_type=jnp.float32) + params["b3"]


if __name__ == "__main__":
    num_state, num_action = 16, 4
    batch = 32  # small demo batch; the tile chooser splits it -> 2 grid steps

    key = jax.random.PRNGKey(0)
    key, kx = jax.random.split(key)
    x = jax.random.normal(kx, (batch, num_state), jnp.float32)
    params = init_dqn_params(key, num_state, num_action, hidden=(64, 64))

    prepared = prepare_params(params)          # one-time padding / bf16 cast
    out = dqn_forward(x, prepared)
    out = jax.block_until_ready(out)

    ref = dqn_reference(x, params)
    assert out.shape == (batch, num_action)
    assert jnp.allclose(out, ref, atol=1e-3, rtol=1e-3), "mismatch vs reference"

    # Loose sanity check against full-f32 math (bf16 inputs lose ~3 digits).
    ref_f32 = jnp.maximum(x @ params["w1"] + params["b1"], 0.0)
    ref_f32 = jnp.maximum(ref_f32 @ params["w2"] + params["b2"], 0.0)
    ref_f32 = ref_f32 @ params["w3"] + params["b3"]
    assert jnp.allclose(out, ref_f32, atol=5e-2, rtol=5e-2)

    print("KERNEL_OK")
</pallas_src>

<mosaic_0001>
module attributes {stable_mosaic.version = 11 : i64} {
  func.func @dqn_kernel(%arg0: i32, %arg1: memref<16x16xf32, #tpu.memory_space<vmem>>, %arg2: memref<16x128xbf16, #tpu.memory_space<vmem>>, %arg3: memref<1x128xf32, #tpu.memory_space<vmem>>, %arg4: memref<128x128xbf16, #tpu.memory_space<vmem>>, %arg5: memref<1x128xf32, #tpu.memory_space<vmem>>, %arg6: memref<128x4xbf16, #tpu.memory_space<vmem>>, %arg7: memref<1x4xf32, #tpu.memory_space<vmem>>, %arg8: memref<16x4xf32, #tpu.memory_space<vmem>>) attributes {dimension_semantics = [#tpu.dimension_semantics<parallel>], iteration_bounds = array<i64: 2>, scalar_prefetch = 0 : i64, scratch_operands = 0 : i64, tpu.core_type = #tpu.core_type<tc>, window_params = [{transform_indices = @transform_0, window_bounds = array<i64: 16, 16>}, {pipeline_mode = #tpu.pipeline_mode<synchronous>, transform_indices = @transform_1, window_bounds = array<i64: 16, 128>}, {pipeline_mode = #tpu.pipeline_mode<synchronous>, transform_indices = @transform_2, window_bounds = array<i64: 1, 128>}, {pipeline_mode = #tpu.pipeline_mode<synchronous>, transform_indices = @transform_3, window_bounds = array<i64: 128, 128>}, {pipeline_mode = #tpu.pipeline_mode<synchronous>, transform_indices = @transform_4, window_bounds = array<i64: 1, 128>}, {pipeline_mode = #tpu.pipeline_mode<synchronous>, transform_indices = @transform_5, window_bounds = array<i64: 128, 4>}, {pipeline_mode = #tpu.pipeline_mode<synchronous>, transform_indices = @transform_6, window_bounds = array<i64: 1, 4>}, {transform_indices = @transform_7, window_bounds = array<i64: 16, 4>}]} {
    %c0 = arith.constant 0 : index
    %c0_0 = arith.constant 0 : index
    %0 = vector.load %arg1[%c0, %c0_0] : memref<16x16xf32, #tpu.memory_space<vmem>>, vector<16x16xf32>
    %1 = arith.truncf %0 : vector<16x16xf32> to vector<16x16xbf16>
    %c0_1 = arith.constant 0 : index
    %c0_2 = arith.constant 0 : index
    %2 = vector.load %arg2[%c0_1, %c0_2] : memref<16x128xbf16, #tpu.memory_space<vmem>>, vector<16x128xbf16>
    %cst = arith.constant dense<0.000000e+00> : vector<16x128xf32>
    %3 = tpu.matmul %1, %2, %cst {dimension_numbers = #tpu.dot_dimension_numbers<[1], [0], [0], [1], [0, 0, 1, 1], [], []>} : vector<16x16xbf16>, vector<16x128xbf16>, vector<16x128xf32> -> vector<16x128xf32>
    %c0_3 = arith.constant 0 : index
    %c0_4 = arith.constant 0 : index
    %4 = vector.load %arg3[%c0_3, %c0_4] : memref<1x128xf32, #tpu.memory_space<vmem>>, vector<1x128xf32>
    %5 = vector.broadcast %4 : vector<1x128xf32> to vector<16x128xf32>
    %6 = arith.addf %3, %5 : vector<16x128xf32>
    %cst_5 = arith.constant 0.000000e+00 : f32
    %7 = vector.broadcast %cst_5 : f32 to vector<16x128xf32>
    %8 = arith.maximumf %6, %7 : vector<16x128xf32>
    %9 = arith.truncf %8 : vector<16x128xf32> to vector<16x128xbf16>
    %c0_6 = arith.constant 0 : index
    %c0_7 = arith.constant 0 : index
    %10 = vector.load %arg4[%c0_6, %c0_7] : memref<128x128xbf16, #tpu.memory_space<vmem>>, vector<128x128xbf16>
    %cst_8 = arith.constant dense<0.000000e+00> : vector<16x128xf32>
    %11 = tpu.matmul %9, %10, %cst_8 {dimension_numbers = #tpu.dot_dimension_numbers<[1], [0], [0], [1], [0, 0, 1, 1], [], []>} : vector<16x128xbf16>, vector<128x128xbf16>, vector<16x128xf32> -> vector<16x128xf32>
    %c0_9 = arith.constant 0 : index
    %c0_10 = arith.constant 0 : index
    %12 = vector.load %arg5[%c0_9, %c0_10] : memref<1x128xf32, #tpu.memory_space<vmem>>, vector<1x128xf32>
    %13 = vector.broadcast %12 : vector<1x128xf32> to vector<16x128xf32>
    %14 = arith.addf %11, %13 : vector<16x128xf32>
    %cst_11 = arith.constant 0.000000e+00 : f32
    %15 = vector.broadcast %cst_11 : f32 to vector<16x128xf32>
    %16 = arith.maximumf %14, %15 : vector<16x128xf32>
    %17 = arith.truncf %16 : vector<16x128xf32> to vector<16x128xbf16>
    %c0_12 = arith.constant 0 : index
    %c0_13 = arith.constant 0 : index
    %18 = vector.load %arg6[%c0_12, %c0_13] : memref<128x4xbf16, #tpu.memory_space<vmem>>, vector<128x4xbf16>
    %cst_14 = arith.constant dense<0.000000e+00> : vector<16x4xf32>
    %19 = tpu.matmul %17, %18, %cst_14 {dimension_numbers = #tpu.dot_dimension_numbers<[1], [0], [0], [1], [0, 0, 1, 1], [], []>} : vector<16x128xbf16>, vector<128x4xbf16>, vector<16x4xf32> -> vector<16x4xf32>
    %c0_15 = arith.constant 0 : index
    %c0_16 = arith.constant 0 : index
    %20 = vector.load %arg7[%c0_15, %c0_16] : memref<1x4xf32, #tpu.memory_space<vmem>>, vector<1x4xf32>
    %21 = vector.broadcast %20 : vector<1x4xf32> to vector<16x4xf32>
    %22 = arith.addf %19, %21 : vector<16x4xf32>
    %c0_17 = arith.constant 0 : index
    %c0_18 = arith.constant 0 : index
    %23 = vector.load %arg8[%c0_17, %c0_18] : memref<16x4xf32, #tpu.memory_space<vmem>>, vector<16x4xf32>
    tpu.vector_store %arg8[%c0_17, %c0_18], %22 {strides = array<i32>} : memref<16x4xf32, #tpu.memory_space<vmem>>, vector<16x4xf32>,
    return
  }
  func.func @transform_0(%arg0: i32) -> (i32, i32) {
    %c0_i32 = arith.constant 0 : i32
    %c0_i32_0 = arith.constant 0 : i32
    return %arg0, %c0_i32 : i32, i32
  }
  func.func @transform_1(%arg0: i32) -> (i32, i32) {
    %c0_i32 = arith.constant 0 : i32
    %c0_i32_0 = arith.constant 0 : i32
    %c0_i32_1 = arith.constant 0 : i32
    return %c0_i32, %c0_i32_0 : i32, i32
  }
  func.func @transform_2(%arg0: i32) -> (i32, i32) {
    %c0_i32 = arith.constant 0 : i32
    %c0_i32_0 = arith.constant 0 : i32
    %c0_i32_1 = arith.constant 0 : i32
    return %c0_i32, %c0_i32_0 : i32, i32
  }
  func.func @transform_3(%arg0: i32) -> (i32, i32) {
    %c0_i32 = arith.constant 0 : i32
    %c0_i32_0 = arith.constant 0 : i32
    %c0_i32_1 = arith.constant 0 : i32
    return %c0_i32, %c0_i32_0 : i32, i32
  }
  func.func @transform_4(%arg0: i32) -> (i32, i32) {
    %c0_i32 = arith.constant 0 : i32
    %c0_i32_0 = arith.constant 0 : i32
    %c0_i32_1 = arith.constant 0 : i32
    return %c0_i32, %c0_i32_0 : i32, i32
  }
  func.func @transform_5(%arg0: i32) -> (i32, i32) {
    %c0_i32 = arith.constant 0 : i32
    %c0_i32_0 = arith.constant 0 : i32
    %c0_i32_1 = arith.constant 0 : i32
    return %c0_i32, %c0_i32_0 : i32, i32
  }
  func.func @transform_6(%arg0: i32) -> (i32, i32) {
    %c0_i32 = arith.constant 0 : i32
    %c0_i32_0 = arith.constant 0 : i32
    %c0_i32_1 = arith.constant 0 : i32
    return %c0_i32, %c0_i32_0 : i32, i32
  }
  func.func @transform_7(%arg0: i32) -> (i32, i32) {
    %c0_i32 = arith.constant 0 : i32
    %c0_i32_0 = arith.constant 0 : i32
    return %arg0, %c0_i32 : i32, i32
  }
}

</mosaic_0001>

<bundles_post_ra>
// kernel: tpu_custom_call.1
= control target key start
LH: loop header
LB: loop body
LE: loop exit
PB: predicated region body
PF: predicated region fallthrough
CT: control target
= control target key end

     0   :  { %s701_s24 = smov 0   ;;  %s785_s0 = inlined_call_operand.vmem [shape: f32[32,16], index: 0, kind: input, shape index: {}]   ;;  %s786_s1 = inlined_call_operand.vmem [shape: bf16[16,128], index: 1, kind: input, shape index: {}]   ;;  %s787_s2 = inlined_call_operand.vmem [shape: f32[1,128], index: 2, kind: input, shape index: {}]   ;;  %s788_s3 = inlined_call_operand.vmem [shape: bf16[128,128], index: 3, kind: input, shape index: {}]   ;;  %s789_s4 = inlined_call_operand.vmem [shape: f32[1,128], index: 4, kind: input, shape index: {}]   ;;  %s790_s5 = inlined_call_operand.vmem [shape: bf16[128,4], index: 5, kind: input, shape index: {}]   ;;  %s791_s6 = inlined_call_operand.vmem [shape: f32[1,4], index: 6, kind: input, shape index: {}]   ;;  %s792_s7 = inlined_call_operand.vmem [shape: f32[32,4], index: 7, kind: output, shape index: {}]  }
   0x1 LB: > { %s545_s25 = sadd.s32 4294967295, %s659_s24   ;;  %p549_p0 = scmp.ge.s32.totalorder %s659_s24, 1  ;;  %s659_s24 = sphi %s701_s24, %s17_s24  }
   0x2   : > { %p238_p1 = scmp.lt.s32.totalorder %s659_s24, 3 }
   0x4   : > { %p239_p2 = pnand %p549_p0, %p238_p1 }
   0x5   : > { %s550_s28 = sshll.u32 (!%p239_p2), %s545_s25, 1 }
   0x6   : > { %242 = sbr.rel (%p239_p2) target bundleno = 440 (0x1b8), region = 48  ;;  %p271_p3 = scmp.lt.s32.totalorder (!%p239_p2), %s550_s28, 3 }
   0xb   : > { %v625_v0 = vld [vmem:[%s786_s1] sm:$0xff]  ;;  %v633_v1 = vld [vmem:[%s788_s3 + $0x38] sm:$0xff]  ;;  %v632_v2 = vld [vmem:[%s788_s3 + $0x30] sm:$0xff]  ;;  %s794_s28 = smov (!%p271_p3, %s550_s28), 3  ;;  %vm298_vm0 = vcmask 130048   ;;  %vm486_vm1 = vcmask 31744  }
   0xc   : > { %309 = vmatpush.bf16.msra.mxu0 %v625_v0  ;;  %387 = vmatpush.bf16.msra.mxu1 %v633_v1  ;;  %s551_s10 = sshll.u32 %s794_s28, 3  ;;  %v631_v3 = vld [vmem:[%s788_s3 + $0x28] sm:$0xff]  ;;  %v630_v7 = vld [vmem:[%s788_s3 + $0x20] sm:$0xff]  ;;  %v629_v8 = vld [vmem:[%s788_s3 + $0x18] sm:$0xff] }
   0xd   : > { %s274_s13 = scalar_lea.vmem %s785_s0, %s551_s10  ;;  %v628_v9 = vld [vmem:[%s788_s3 + $0x10] sm:$0xff]  ;;  %v627_v10 = vld [vmem:[%s788_s3 + $0x8] sm:$0xff]  ;;  %v626_v11 = vld [vmem:[%s788_s3] sm:$0xff]  ;;  %s280_s9 = scalar_lea.vmem %s792_s7, %s551_s10 }
   0xe   : > { %v283_v4 = vld [vmem:[%s274_s13] sm:$0xff]  ;;  %v284_v5 = vld [vmem:[%s274_s13 + $0x8] sm:$0xff]  ;;  %v641_v12 = vld [vmem:[%s790_s5 + $0x38] sm:$0xff] }
   0xf   : > { %v285_v6 = vpack.c.bf16 %v284_v5, %v283_v4  ;;  %472 = vmatpush.bf16.msra.mxu2 %v641_v12  ;;  %v640_v13 = vld [vmem:[%s790_s5 + $0x30] sm:$0xff]  ;;  %v639_v14 = vld [vmem:[%s790_s5 + $0x28] sm:$0xff]  ;;  %v638_v15 = vld [vmem:[%s790_s5 + $0x20] sm:$0xff] }
  0x10   : > { %388 = vmatpush.bf16.msra.mxu1 %v632_v2  ;;  %v650_v17 = vld [vmem:[%s787_s2] ss:$0 sm:$0xff]  ;;  %v637_v24 = vld [vmem:[%s790_s5 + $0x18] sm:$0xff]  ;;  %v636_v25 = vld [vmem:[%s790_s5 + $0x10] sm:$0xff] }
  0x11   : > { %558 = vmatmul.msk.bf16.vlgmr.msra.gmra.mxu0 %vm298_vm0, %v285_v6  ;;  %v635_v26 = vld [vmem:[%s790_s5 + $0x8] sm:$0xff]  ;;  %v634_v27 = vld [vmem:[%s790_s5] sm:$0xff] }
  0x12   : > { %v651_v29 = vld [vmem:[%s789_s4] ss:$0 sm:$0xff] }
  0x13   : > { %473 = vmatpush.bf16.msra.mxu2 %v640_v13  ;;  %v652_v36 = vld [vmem:[%s791_s6] ss:$0 sm:$0xff] }
  0x14   : > { %389 = vmatpush.bf16.msra.mxu1 %v631_v3 }
  0x17   : > { %474 = vmatpush.bf16.msra.mxu2 %v639_v14 }
  0x18   : > { %390 = vmatpush.bf16.msra.mxu1 %v630_v7 }
  0x1b   : > { %475 = vmatpush.bf16.msra.mxu2 %v638_v15 }
  0x1c   : > { %391 = vmatpush.bf16.msra.mxu1 %v629_v8 }
  0x1f   : > { %476 = vmatpush.bf16.msra.mxu2 %v637_v24 }
  0x20   : > { %392 = vmatpush.bf16.msra.mxu1 %v628_v9 }
  0x23   : > { %477 = vmatpush.bf16.msra.mxu2 %v636_v25 }
  0x24   : > { %393 = vmatpush.bf16.msra.mxu1 %v627_v10 }
  0x27   : > { %478 = vmatpush.bf16.msra.mxu2 %v635_v26 }
  0x28   : > { %394 = vmatpush.bf16.msra.mxu1 %v626_v11 }
  0x2b   : > { %479 = vmatpush.bf16.msra.mxu2 %v634_v27 }
  0x8e   : > { %v311_v16 = vpop.f32.mrf.mxu0 }
  0x8f   : > { %v312_v18 = vadd.f32 %v650_v17, %v311_v16 }
  0x91   : > { %v316_v21 = vmax.f32 %v312_v18, 0.0 }
  0x96   : > { %v313_v19 = vpop.f32.mrf.mxu0 }
  0x97   : > { %v314_v20 = vadd.f32 %v650_v17, %v313_v19 }
  0x99   : > { %v317_v22 = vmax.f32 %v314_v20, 0.0 }
  0x9b   : > { %v318_v23 = vpack.c.bf16 %v317_v22, %v316_v21 }
  0x9d   : > { %395 = vmatmul.bf16.vlgmr.msra.gmra.mxu1 %v318_v23 }
 0x11a   : > { %v396_v28 = vpop.f32.mrf.mxu1 }
 0x11b   : > { %v397_v30 = vadd.f32 %v651_v29, %v396_v28 }
 0x11d   : > { %v401_v33 = vmax.f32 %v397_v30, 0.0 }
 0x122   : > { %v398_v31 = vpop.f32.mrf.mxu1 }
 0x123   : > { %v399_v32 = vadd.f32 %v651_v29, %v398_v31 }
 0x125   : > { %v402_v34 = vmax.f32 %v399_v32, 0.0 }
 0x127   : > { %v403_v35 = vpack.c.bf16 %v402_v34, %v401_v33 }
 0x129   : > { %480 = vmatmul.bf16.vlgmr.msra.gmra.mxu2 %v403_v35 }
 0x1ac   : > { %v481_v37 = vpop.f32.mrf.mxu2 }
 0x1ad   : > { %v482_v38 = vadd.f32 %v652_v36, %v481_v37 }
 0x1af   : > { %487 = vst.msk [vmem:[%s280_s9] sm:$0xff] %vm486_vm1, %v482_v38 }
 0x1b4   : > { %v483_v39 = vpop.f32.mrf.mxu2 }
 0x1b5   : > { %v484_v40 = vadd.f32 %v652_v36, %v483_v39 }
 0x1b7   : > { %488 = vst.msk [vmem:[%s280_s9 + $0x8] sm:$0xff] %vm486_vm1, %v484_v40 }
 0x1b8 PF: > { %s17_s24 = sadd.s32 1, %s659_s24  }
 0x1b9   : > { %p14_p4 = scmp.ge.s32.totalorder %s17_s24, 4  }
 0x1bb   :  { %16 = sbr.rel (!%p14_p4) target bundleno = 1 (0x1), region = 78 }

</bundles_post_ra>
